<compile_context>
chip_gen: v5e
topology: v5e:2x2
jax: 0.10.0
libtpu: 0.0.40
codegen_flags: <defaults>
</compile_context>

<pallas_src>
import jax
import jax.numpy as jnp
from jax.experimental import pallas as pl
from jax.experimental.pallas import tpu as pltpu

_NEG_BIG = -1e30                 # finite "minus infinity" for padded lanes
_VMEM_BUDGET = 56 << 20          # conservative: fits v7x (64 MiB/TC) with headroom


def _round_up(x, m):
    return ((x + m - 1) // m) * m


# ---------------------------------------------------------------------------
# Masked language model head: log_softmax(x @ W + b, axis=-1)
# ---------------------------------------------------------------------------
def _mlm_kernel(x_ref, w_ref, b_ref, o_ref, m_ref, s_ref):
    # x_ref: (tm, H)   w_ref: (H, tv)   b_ref: (1, tv)
    # o_ref: (tm, Vp)  -- resident across the vocab grid axis
    # m_ref/s_ref: (tm, 1) running max / running sum-exp scratch
    j = pl.program_id(1)
    nv = pl.num_programs(1)
    tv = w_ref.shape[1]

    @pl.when(j == 0)
    def _init():
        m_ref[...] = jnp.full_like(m_ref, -jnp.inf)
        s_ref[...] = jnp.zeros_like(s_ref)

    logits = jnp.dot(x_ref[...], w_ref[...], preferred_element_type=jnp.float32)
    logits = logits + b_ref[...]

    # online log-sum-exp update over the vocab tiles
    m_prev = m_ref[...]
    m_new = jnp.maximum(m_prev, jnp.max(logits, axis=-1, keepdims=True))
    s_ref[...] = (s_ref[...] * jnp.exp(m_prev - m_new)
                  + jnp.sum(jnp.exp(logits - m_new), axis=-1, keepdims=True))
    m_ref[...] = m_new

    # write raw logits into the lane-aligned column slice of the resident output
    col = pl.multiple_of(j * tv, tv)
    o_ref[:, pl.ds(col, tv)] = logits.astype(o_ref.dtype)

    @pl.when(j == nv - 1)
    def _finalize():
        lse = m_ref[...] + jnp.log(s_ref[...])        # (tm, 1)
        o_ref[...] = o_ref[...] - lse.astype(o_ref.dtype)


def _mlm_vmem_estimate(tm, tv, Vp, H, x_bytes, w_bytes):
    return (2 * tm * H * x_bytes      # x tiles (double-buffered)
            + 2 * H * tv * w_bytes    # weight tiles (double-buffered)
            + 2 * tv * 4              # bias tiles
            + 2 * tm * Vp * 4         # resident output block (+writeback buffer)
            + 4 * tm * 4)             # m/s scratch


def masked_language_model(x, w, b, *, tm=256, tv=512):
    """x: (B, T, H) -> log_softmax(x @ w + b): (B, T, V)."""
    B, T, H = x.shape
    Hw, V = w.shape
    assert Hw == H, "weight must be (hidden, vocab)"
    rows = B * T

    x_bytes = jnp.dtype(x.dtype).itemsize
    w_bytes = jnp.dtype(w.dtype).itemsize

    # lane-dense vocab tile and padded vocab extent
    tv = min(tv, _round_up(V, 128))
    Vp = _round_up(V, tv)

    # adaptive row tile: biggest (<= tm, multiple of 8) whose VMEM estimate fits
    tm = min(tm, _round_up(rows, 8))
    while tm > 8 and _mlm_vmem_estimate(tm, tv, Vp, H, x_bytes, w_bytes) > _VMEM_BUDGET:
        tm = max(8, _round_up(tm // 2, 8))
    rows_p = _round_up(rows, tm)

    x2d = x.reshape(rows, H)
    if rows_p != rows:
        x2d = jnp.pad(x2d, ((0, rows_p - rows), (0, 0)))
    b2d = b.reshape(1, V)
    if Vp != V:
        w = jnp.pad(w, ((0, 0), (0, Vp - V)))
        b2d = jnp.pad(b2d, ((0, 0), (0, Vp - V)), constant_values=_NEG_BIG)

    grid = (rows_p // tm, Vp // tv)

    est = _mlm_vmem_estimate(tm, tv, Vp, H, x_bytes, w_bytes)
    vmem_limit = int(min(max(est + (4 << 20), 32 << 20), 60 << 20))

    out = pl.pallas_call(
        _mlm_kernel,
        out_shape=jax.ShapeDtypeStruct((rows_p, Vp), jnp.float32),
        grid=grid,
        in_specs=[
            pl.BlockSpec((tm, H), lambda i, j: (i, 0)),   # row tile of hidden states
            pl.BlockSpec((H, tv), lambda i, j: (0, j)),   # streamed weight tile
            pl.BlockSpec((1, tv), lambda i, j: (0, j)),   # bias tile
        ],
        out_specs=pl.BlockSpec((tm, Vp), lambda i, j: (i, 0)),
        scratch_shapes=[pltpu.VMEM((tm, 1), jnp.float32),   # running max
                        pltpu.VMEM((tm, 1), jnp.float32)],  # running sum-exp
        compiler_params=pltpu.CompilerParams(
            dimension_semantics=("parallel", "arbitrary"),
            vmem_limit_bytes=vmem_limit),
    )(x2d, w, b2d)

    return out[:rows, :V].reshape(B, T, V)


# ---------------------------------------------------------------------------
# Next sentence prediction head: log_softmax(x[:, 0] @ w + b, axis=-1)
# ---------------------------------------------------------------------------
def _nsp_kernel(x_ref, w_ref, b_ref, o_ref):
    # x_ref: (tb, H) CLS rows, w_ref: (H, Cp), b_ref: (1, Cp), o_ref: (tb, Cp)
    logits = jnp.dot(x_ref[...], w_ref[...], preferred_element_type=jnp.float32)
    logits = logits + b_ref[...]
    m = jnp.max(logits, axis=-1, keepdims=True)
    lse = m + jnp.log(jnp.sum(jnp.exp(logits - m), axis=-1, keepdims=True))
    o_ref[...] = (logits - lse).astype(o_ref.dtype)


def next_sentence_prediction(x, w, b, *, tb=256):
    """x: (B, T, H) -> log_softmax(x[:, 0] @ w + b): (B, 2)."""
    B, T, H = x.shape
    Hw, C = w.shape
    assert Hw == H
    # slice the CLS row in XLA so the kernel never DMAs the full (B, T, H) tensor
    x_cls = x[:, 0, :]

    # lane-dense output slab: pad the class dim to 128; padded bias = -1e30 so the
    # log-sum-exp only sees the real classes.  Result sliced back outside.
    Cp = _round_up(max(C, 1), 128)
    w_p = jnp.pad(w, ((0, 0), (0, Cp - C)))
    b_p = jnp.pad(b.reshape(1, C), ((0, 0), (0, Cp - C)), constant_values=_NEG_BIG)

    # tile the batch so large B never blows VMEM
    tb = min(tb, _round_up(B, 8))
    Bp = _round_up(B, tb)
    if Bp != B:
        x_cls = jnp.pad(x_cls, ((0, Bp - B), (0, 0)))

    out = pl.pallas_call(
        _nsp_kernel,
        out_shape=jax.ShapeDtypeStruct((Bp, Cp), jnp.float32),
        grid=(Bp // tb,),
        in_specs=[
            pl.BlockSpec((tb, H), lambda i: (i, 0)),
            pl.BlockSpec((H, Cp), lambda i: (0, 0)),
            pl.BlockSpec((1, Cp), lambda i: (0, 0)),
        ],
        out_specs=pl.BlockSpec((tb, Cp), lambda i: (i, 0)),
        compiler_params=pltpu.CompilerParams(
            dimension_semantics=("parallel",)),
    )(x_cls, w_p, b_p)
    return out[:B, :C]


def bert_lm_forward(hidden_states, params):
    """Equivalent of BERTLM.forward applied to the encoder output.

    Returns (next_sentence_logprobs (B, 2), mask_lm_logprobs (B, T, V)).
    """
    nsp = next_sentence_prediction(hidden_states, params["w_nsp"], params["b_nsp"])
    mlm = masked_language_model(hidden_states, params["w_mlm"], params["b_mlm"])
    return nsp, mlm


# ---------------------------------------------------------------------------
# Deterministic parameter init (PyTorch nn.Linear default: U(-1/sqrt(in), 1/sqrt(in)))
# ---------------------------------------------------------------------------
def init_params(key, hidden, vocab_size):
    k1, k2, k3, k4 = jax.random.split(key, 4)
    bound = 1.0 / jnp.sqrt(hidden)
    return {
        # stored as (in, out) = (hidden, vocab) / (hidden, 2)
        "w_mlm": jax.random.uniform(k1, (hidden, vocab_size), jnp.float32, -bound, bound),
        "b_mlm": jax.random.uniform(k2, (1, vocab_size), jnp.float32, -bound, bound),
        "w_nsp": jax.random.uniform(k3, (hidden, 2), jnp.float32, -bound, bound),
        "b_nsp": jax.random.uniform(k4, (1, 2), jnp.float32, -bound, bound),
    }


if __name__ == "__main__":
    B, T, H, V = 2, 8, 32, 128   # batch, seq, hidden, vocab (small demo shapes)

    root = jax.random.PRNGKey(0)
    k_x, k_p = jax.random.split(root)

    # Precomputed BERT encoder output (stand-in for bert(x, segment_label)).
    hidden_states = jax.random.normal(k_x, (B, T, H), jnp.float32)
    params = init_params(k_p, H, V)

    nsp, mlm = jax.jit(bert_lm_forward)(hidden_states, params)
    nsp, mlm = jax.block_until_ready((nsp, mlm))

    # Pure-JAX reference check (same math as the PyTorch module).
    ref_mlm = jax.nn.log_softmax(hidden_states @ params["w_mlm"] + params["b_mlm"], axis=-1)
    ref_nsp = jax.nn.log_softmax(hidden_states[:, 0] @ params["w_nsp"] + params["b_nsp"], axis=-1)
    assert nsp.shape == (B, 2) and mlm.shape == (B, T, V)
    assert jnp.allclose(mlm, ref_mlm, atol=2e-3, rtol=2e-3)
    assert jnp.allclose(nsp, ref_nsp, atol=2e-3, rtol=2e-3)

    print("KERNEL_OK")
</pallas_src>

<mosaic_0001>
module attributes {stable_mosaic.version = 11 : i64} {
  func.func @_mlm_kernel(%arg0: i32, %arg1: i32, %arg2: memref<16x32xf32, #tpu.memory_space<vmem>>, %arg3: memref<32x128xf32, #tpu.memory_space<vmem>>, %arg4: memref<1x128xf32, #tpu.memory_space<vmem>>, %arg5: memref<16x128xf32, #tpu.memory_space<vmem>>, %arg6: memref<16x1xf32, #tpu.memory_space<vmem>>, %arg7: memref<16x1xf32, #tpu.memory_space<vmem>>) attributes {dimension_semantics = [#tpu.dimension_semantics<parallel>, #tpu.dimension_semantics<arbitrary>], iteration_bounds = array<i64: 1, 1>, scalar_prefetch = 0 : i64, scratch_operands = 2 : i64, tpu.core_type = #tpu.core_type<tc>, window_params = [{transform_indices = @transform_0, window_bounds = array<i64: 16, 32>}, {transform_indices = @transform_1, window_bounds = array<i64: 32, 128>}, {transform_indices = @transform_2, window_bounds = array<i64: 1, 128>}, {transform_indices = @transform_3, window_bounds = array<i64: 16, 128>}]} {
    %c0_i32 = arith.constant 0 : i32
    %0 = arith.cmpi eq, %arg1, %c0_i32 : i32
    %1 = arith.extui %0 : i1 to i32
    %c0_i32_0 = arith.constant 0 : i32
    %2 = arith.cmpi ne, %1, %c0_i32_0 : i32
    scf.if %2 {
      %cst_19 = arith.constant 0xFF800000 : f32
      %32 = vector.broadcast %cst_19 : f32 to vector<16x1xf32>
      %c0_20 = arith.constant 0 : index
      %c0_21 = arith.constant 0 : index
      %33 = vector.load %arg6[%c0_20, %c0_21] : memref<16x1xf32, #tpu.memory_space<vmem>>, vector<16x1xf32>
      tpu.vector_store %arg6[%c0_20, %c0_21], %32 {strides = array<i32>} : memref<16x1xf32, #tpu.memory_space<vmem>>, vector<16x1xf32>,
      %cst_22 = arith.constant 0.000000e+00 : f32
      %34 = vector.broadcast %cst_22 : f32 to vector<16x1xf32>
      %c0_23 = arith.constant 0 : index
      %c0_24 = arith.constant 0 : index
      %35 = vector.load %arg7[%c0_23, %c0_24] : memref<16x1xf32, #tpu.memory_space<vmem>>, vector<16x1xf32>
      tpu.vector_store %arg7[%c0_23, %c0_24], %34 {strides = array<i32>} : memref<16x1xf32, #tpu.memory_space<vmem>>, vector<16x1xf32>,
    } else {
    }
    %c0 = arith.constant 0 : index
    %c0_1 = arith.constant 0 : index
    %3 = vector.load %arg2[%c0, %c0_1] : memref<16x32xf32, #tpu.memory_space<vmem>>, vector<16x32xf32>
    %c0_2 = arith.constant 0 : index
    %c0_3 = arith.constant 0 : index
    %4 = vector.load %arg3[%c0_2, %c0_3] : memref<32x128xf32, #tpu.memory_space<vmem>>, vector<32x128xf32>
    %cst = arith.constant dense<0.000000e+00> : vector<16x128xf32>
    %5 = tpu.matmul %3, %4, %cst {dimension_numbers = #tpu.dot_dimension_numbers<[1], [0], [0], [1], [0, 0, 1, 1], [], []>} : vector<16x32xf32>, vector<32x128xf32>, vector<16x128xf32> -> vector<16x128xf32>
    %c0_4 = arith.constant 0 : index
    %c0_5 = arith.constant 0 : index
    %6 = vector.load %arg4[%c0_4, %c0_5] : memref<1x128xf32, #tpu.memory_space<vmem>>, vector<1x128xf32>
    %7 = vector.broadcast %6 : vector<1x128xf32> to vector<16x128xf32>
    %8 = arith.addf %5, %7 : vector<16x128xf32>
    %c0_6 = arith.constant 0 : index
    %c0_7 = arith.constant 0 : index
    %9 = vector.load %arg6[%c0_6, %c0_7] : memref<16x1xf32, #tpu.memory_space<vmem>>, vector<16x1xf32>
    %cst_8 = arith.constant dense<0xFF800000> : vector<16xf32>
    %10 = vector.multi_reduction <maximumf>, %8, %cst_8 [1] : vector<16x128xf32> to vector<16xf32>
    %11 = vector.shape_cast %10 : vector<16xf32> to vector<16x1xf32>
    %12 = arith.maximumf %9, %11 : vector<16x1xf32>
    %c0_9 = arith.constant 0 : index
    %c0_10 = arith.constant 0 : index
    %13 = vector.load %arg7[%c0_9, %c0_10] : memref<16x1xf32, #tpu.memory_space<vmem>>, vector<16x1xf32>
    %14 = arith.subf %9, %12 : vector<16x1xf32>
    %15 = math.exp %14 : vector<16x1xf32>
    %16 = arith.mulf %13, %15 : vector<16x1xf32>
    %17 = vector.broadcast %12 : vector<16x1xf32> to vector<16x128xf32>
    %18 = arith.subf %8, %17 : vector<16x128xf32>
    %19 = math.exp %18 : vector<16x128xf32>
    %cst_11 = arith.constant dense<0.000000e+00> : vector<16xf32>
    %20 = vector.multi_reduction <add>, %19, %cst_11 [1] : vector<16x128xf32> to vector<16xf32>
    %21 = vector.shape_cast %20 : vector<16xf32> to vector<16x1xf32>
    %22 = arith.addf %16, %21 : vector<16x1xf32>
    %c0_12 = arith.constant 0 : index
    %c0_13 = arith.constant 0 : index
    %23 = vector.load %arg7[%c0_12, %c0_13] : memref<16x1xf32, #tpu.memory_space<vmem>>, vector<16x1xf32>
    tpu.vector_store %arg7[%c0_12, %c0_13], %22 {strides = array<i32>} : memref<16x1xf32, #tpu.memory_space<vmem>>, vector<16x1xf32>,
    %c0_14 = arith.constant 0 : index
    %c0_15 = arith.constant 0 : index
    %24 = vector.load %arg6[%c0_14, %c0_15] : memref<16x1xf32, #tpu.memory_space<vmem>>, vector<16x1xf32>
    tpu.vector_store %arg6[%c0_14, %c0_15], %12 {strides = array<i32>} : memref<16x1xf32, #tpu.memory_space<vmem>>, vector<16x1xf32>,
    %c128_i32 = arith.constant 128 : i32
    %25 = arith.muli %arg1, %c128_i32 : i32
    %26 = tpu.assume_multiple %25, 128 : i32
    %c0_16 = arith.constant 0 : index
    %27 = arith.index_cast %26 : i32 to index
    %28 = vector.load %arg5[%c0_16, %27] : memref<16x128xf32, #tpu.memory_space<vmem>>, vector<16x128xf32>
    tpu.vector_store %arg5[%c0_16, %27], %8 {strides = array<i32>} : memref<16x128xf32, #tpu.memory_space<vmem>>, vector<16x128xf32>,
    %c0_i32_17 = arith.constant 0 : i32
    %29 = arith.cmpi eq, %arg1, %c0_i32_17 : i32
    %30 = arith.extui %29 : i1 to i32
    %c0_i32_18 = arith.constant 0 : i32
    %31 = arith.cmpi ne, %30, %c0_i32_18 : i32
    scf.if %31 {
      %c0_19 = arith.constant 0 : index
      %c0_20 = arith.constant 0 : index
      %32 = vector.load %arg6[%c0_19, %c0_20] : memref<16x1xf32, #tpu.memory_space<vmem>>, vector<16x1xf32>
      %c0_21 = arith.constant 0 : index
      %c0_22 = arith.constant 0 : index
      %33 = vector.load %arg7[%c0_21, %c0_22] : memref<16x1xf32, #tpu.memory_space<vmem>>, vector<16x1xf32>
      %34 = math.log %33 : vector<16x1xf32>
      %35 = arith.addf %32, %34 : vector<16x1xf32>
      %c0_23 = arith.constant 0 : index
      %c0_24 = arith.constant 0 : index
      %36 = vector.load %arg5[%c0_23, %c0_24] : memref<16x128xf32, #tpu.memory_space<vmem>>, vector<16x128xf32>
      %37 = vector.broadcast %35 : vector<16x1xf32> to vector<16x128xf32>
      %38 = arith.subf %36, %37 : vector<16x128xf32>
      %c0_25 = arith.constant 0 : index
      %c0_26 = arith.constant 0 : index
      %39 = vector.load %arg5[%c0_25, %c0_26] : memref<16x128xf32, #tpu.memory_space<vmem>>, vector<16x128xf32>
      tpu.vector_store %arg5[%c0_25, %c0_26], %38 {strides = array<i32>} : memref<16x128xf32, #tpu.memory_space<vmem>>, vector<16x128xf32>,
    } else {
    }
    return
  }
  func.func @transform_0(%arg0: i32, %arg1: i32) -> (i32, i32) {
    %c0_i32 = arith.constant 0 : i32
    %c0_i32_0 = arith.constant 0 : i32
    return %arg0, %c0_i32 : i32, i32
  }
  func.func @transform_1(%arg0: i32, %arg1: i32) -> (i32, i32) {
    %c0_i32 = arith.constant 0 : i32
    %c0_i32_0 = arith.constant 0 : i32
    return %c0_i32, %arg1 : i32, i32
  }
  func.func @transform_2(%arg0: i32, %arg1: i32) -> (i32, i32) {
    %c0_i32 = arith.constant 0 : i32
    %c0_i32_0 = arith.constant 0 : i32
    return %c0_i32, %arg1 : i32, i32
  }
  func.func @transform_3(%arg0: i32, %arg1: i32) -> (i32, i32) {
    %c0_i32 = arith.constant 0 : i32
    %c0_i32_0 = arith.constant 0 : i32
    return %arg0, %c0_i32 : i32, i32
  }
}

module attributes {stable_mosaic.version = 11 : i64} {
  func.func @_nsp_kernel(%arg0: i32, %arg1: memref<8x32xf32, #tpu.memory_space<vmem>>, %arg2: memref<32x128xf32, #tpu.memory_space<vmem>>, %arg3: memref<1x128xf32, #tpu.memory_space<vmem>>, %arg4: memref<8x128xf32, #tpu.memory_space<vmem>>) attributes {dimension_semantics = [#tpu.dimension_semantics<parallel>], iteration_bounds = array<i64: 1>, scalar_prefetch = 0 : i64, scratch_operands = 0 : i64, tpu.core_type = #tpu.core_type<tc>, window_params = [{transform_indices = @transform_0, window_bounds = array<i64: 8, 32>}, {pipeline_mode = #tpu.pipeline_mode<synchronous>, transform_indices = @transform_1, window_bounds = array<i64: 32, 128>}, {pipeline_mode = #tpu.pipeline_mode<synchronous>, transform_indices = @transform_2, window_bounds = array<i64: 1, 128>}, {transform_indices = @transform_3, window_bounds = array<i64: 8, 128>}]} {
    %c0 = arith.constant 0 : index
    %c0_0 = arith.constant 0 : index
    %0 = vector.load %arg1[%c0, %c0_0] : memref<8x32xf32, #tpu.memory_space<vmem>>, vector<8x32xf32>
    %c0_1 = arith.constant 0 : index
    %c0_2 = arith.constant 0 : index
    %1 = vector.load %arg2[%c0_1, %c0_2] : memref<32x128xf32, #tpu.memory_space<vmem>>, vector<32x128xf32>
    %cst = arith.constant dense<0.000000e+00> : vector<8x128xf32>
    %2 = tpu.matmul %0, %1, %cst {dimension_numbers = #tpu.dot_dimension_numbers<[1], [0], [0], [1], [0, 0, 1, 1], [], []>} : vector<8x32xf32>, vector<32x128xf32>, vector<8x128xf32> -> vector<8x128xf32>
    %c0_3 = arith.constant 0 : index
    %c0_4 = arith.constant 0 : index
    %3 = vector.load %arg3[%c0_3, %c0_4] : memref<1x128xf32, #tpu.memory_space<vmem>>, vector<1x128xf32>
    %4 = vector.broadcast %3 : vector<1x128xf32> to vector<8x128xf32>
    %5 = arith.addf %2, %4 : vector<8x128xf32>
    %cst_5 = arith.constant dense<0xFF800000> : vector<8xf32>
    %6 = vector.multi_reduction <maximumf>, %5, %cst_5 [1] : vector<8x128xf32> to vector<8xf32>
    %7 = vector.shape_cast %6 : vector<8xf32> to vector<8x1xf32>
    %8 = vector.broadcast %7 : vector<8x1xf32> to vector<8x128xf32>
    %9 = arith.subf %5, %8 : vector<8x128xf32>
    %10 = math.exp %9 : vector<8x128xf32>
    %cst_6 = arith.constant dense<0.000000e+00> : vector<8xf32>
    %11 = vector.multi_reduction <add>, %10, %cst_6 [1] : vector<8x128xf32> to vector<8xf32>
    %12 = vector.shape_cast %11 : vector<8xf32> to vector<8x1xf32>
    %13 = math.log %12 : vector<8x1xf32>
    %14 = arith.addf %7, %13 : vector<8x1xf32>
    %15 = vector.broadcast %14 : vector<8x1xf32> to vector<8x128xf32>
    %16 = arith.subf %5, %15 : vector<8x128xf32>
    %c0_7 = arith.constant 0 : index
    %c0_8 = arith.constant 0 : index
    %17 = vector.load %arg4[%c0_7, %c0_8] : memref<8x128xf32, #tpu.memory_space<vmem>>, vector<8x128xf32>
    tpu.vector_store %arg4[%c0_7, %c0_8], %16 {strides = array<i32>} : memref<8x128xf32, #tpu.memory_space<vmem>>, vector<8x128xf32>,
    return
  }
  func.func @transform_0(%arg0: i32) -> (i32, i32) {
    %c0_i32 = arith.constant 0 : i32
    %c0_i32_0 = arith.constant 0 : i32
    return %arg0, %c0_i32 : i32, i32
  }
  func.func @transform_1(%arg0: i32) -> (i32, i32) {
    %c0_i32 = arith.constant 0 : i32
    %c0_i32_0 = arith.constant 0 : i32
    %c0_i32_1 = arith.constant 0 : i32
    return %c0_i32, %c0_i32_0 : i32, i32
  }
  func.func @transform_2(%arg0: i32) -> (i32, i32) {
    %c0_i32 = arith.constant 0 : i32
    %c0_i32_0 = arith.constant 0 : i32
    %c0_i32_1 = arith.constant 0 : i32
    return %c0_i32, %c0_i32_0 : i32, i32
  }
  func.func @transform_3(%arg0: i32) -> (i32, i32) {
    %c0_i32 = arith.constant 0 : i32
    %c0_i32_0 = arith.constant 0 : i32
    return %arg0, %c0_i32 : i32, i32
  }
}

</mosaic_0001>

<bundles_post_ra>
// kernel: bert_lm_forward.3
= control target key start
LH: loop header
LB: loop body
LE: loop exit
PB: predicated region body
PF: predicated region fallthrough
CT: control target
= control target key end

     0   :  { %s284_s0 = inlined_call_operand.vmem [shape: f32[16,32], index: 0, kind: input, shape index: {}]   ;;  %s285_s1 = inlined_call_operand.vmem [shape: f32[32,128], index: 1, kind: input, shape index: {}]   ;;  %s286_s2 = inlined_call_operand.vmem [shape: f32[1,128], index: 2, kind: input, shape index: {}]   ;;  %s287_s3 = inlined_call_operand.hbm [shape: f32[16,128], index: 3, kind: output, shape index: {}]  }
   0x1   :  { %v29_v0 = vld [vmem:[%s285_s1 + $0x18] sm:$0xff]  ;;  %v28_v1 = vld [vmem:[%s285_s1 + $0x10] sm:$0xff]  ;;  %v27_v2 = vld [vmem:[%s285_s1 + $0x8] sm:$0xff] }
   0x2   :  { %53 = vmatpush.msra.mxu0 %v29_v0  ;;  %165 = vmatpush.msra.mxu1 %v29_v0 }
   0x3   :  { %8 = vsyncpa [#allocation5], 0  ;;  %v26_v3 = vld [vmem:[%s285_s1] sm:$0xff]  ;;  %vm34_vm0 = vcmask 261120   ;;  %v25_v5 = vld [vmem:[%s284_s0 + $0x8] sm:$0xff]  ;;  %vm19_vm1 = vcmask 7168  }
   0x4   :  { %54 = vmatpush.msra.mxu0 %v28_v1  ;;  %166 = vmatpush.msra.mxu1 %v28_v1  ;;  %v24_v4 = vld [vmem:[%s284_s0] sm:$0xff]  ;;  %v216_v11 = vmov -inf   ;;  %v217_v12 = vmov 0   ;;  %v218_v13 = vmov 0.0   ;;  %s219_s0 = smov [#allocation4]   ;;  %s150_s27 = sshll.u32 %s287_s3, 4  ;;  %s151_s27 = int_to_ptr.hbm [resolvable:$true] %s150_s27 }
   0x5   :  { %v177_v6 = vld [vmem:[%s286_s2] ss:$0 sm:$0xff]  ;;  %20 = vst.msk [vmem:[#allocation2] sm:$0xff] %vm19_vm1, %v216_v11  ;;  %175 = vset.pattern.permute.xlu1 %v217_v12  ;;  %176 = vset.pattern.permute.xlu0 %v217_v12  ;;  %s148_s1 = sshll.u32 %s219_s0, 4  ;;  %s220_s28 = smov 128   ;;  %s149_s1 = int_to_ptr.vmem [resolvable:$true] %s148_s1 }
   0x6   :  { %55 = vmatpush.msra.mxu0 %v27_v2  ;;  %167 = vmatpush.msra.mxu1 %v27_v2  ;;  %21 = vst.msk [vmem:[#allocation2 + $0x8] sm:$0xff] %vm19_vm1, %v216_v11  ;;  %s221_s29 = smov 8  }
   0x7   :  { %22 = vst.msk [vmem:[#allocation3] sm:$0xff] %vm19_vm1, %v218_v13 }
   0x8   :  { %56 = vmatpush.msra.mxu0 %v26_v3  ;;  %168 = vmatpush.msra.mxu1 %v26_v3  ;;  %23 = vst.msk [vmem:[#allocation3 + $0x8] sm:$0xff] %vm19_vm1, %v218_v13 }
   0x9   :  { %163 = vmatmul.msk.f32.vlgmr.msra.gmra.mxu0 %vm34_vm0, %v24_v4  ;;  %164 = vmatmul.msk.f32.vlgmr.msra.gmra.mxu1 %vm34_vm0, %v25_v5 }
   0xc   :  { %v64_v14 = vld [vmem:[#allocation2] sm:$0xff] }
   0xd   :  { %v65_v18 = vld [vmem:[#allocation2 + $0x8] sm:$0xff] }
   0xe   :  { %v72_v33 = vld [vmem:[#allocation3] sm:$0xff] }
   0xf   :  { %v73_v38 = vld [vmem:[#allocation3 + $0x8] sm:$0xff] }
  0x86   :  { %v58_v7 = vpop.f32.mrf.mxu0  ;;  %v61_v9 = vpop.f32.mrf.mxu1 }
  0x87   :  { %v263_v8 = vadd.f32 %v177_v6, %v58_v7  ;;  %v266_v10 = vadd.f32 %v177_v6, %v61_v9 }
  0x89   :  { %66 = vmax.xlane.f32.xlu0 %v263_v8 }
  0x91   :  { %68 = vmax.xlane.f32.xlu0 %v266_v10 }
  0xfc   :  { %v67_v15 = vpop.xlane.xlu0 %66 }
  0xfd   :  { %v70_v16 = vmax.f32 %v64_v14, %v67_v15 }
  0xff   :  { %v74_v17 = vsub.f32 %v64_v14, %v70_v16  ;;  %107 = vst.msk [vmem:[#allocation2] sm:$0xff] %vm19_vm1, %v70_v16  ;;  %84 = vperm.xlu1 %175, %v70_v16  }
 0x101   :  { %v76_v30 = vmul.f32 1.442695, %v74_v17 }
 0x104   :  { %v69_v19 = vpop.xlane.xlu0 %68 }
 0x105   :  { %v71_v20 = vmax.f32 %v65_v18, %v69_v19 }
 0x106   :  { %v118_v46 = vld [vmem:[#allocation2] sm:$0xff] }
 0x107   :  { %v75_v21 = vsub.f32 %v65_v18, %v71_v20  ;;  %108 = vst.msk [vmem:[#allocation2 + $0x8] sm:$0xff] %vm19_vm1, %v71_v20  ;;  %89 = vperm.xlu1 %175, %v71_v20  }
 0x109   :  { %v78_v31 = vmul.f32 1.442695, %v75_v21 }
 0x10e   :  { %v119_v50 = vld [vmem:[#allocation2 + $0x8] sm:$0xff] }
 0x171   :  { %v85_v22 = vpop.permute.xlu1 %84 }
 0x172   :  { %v92_v23 = vsub.f32 %v263_v8, %v85_v22 }
 0x174   :  { %v94_v24 = vmul.f32 1.442695, %v92_v23 }
 0x176   :  { %178 = vpow2.f32 %v94_v24 }
 0x179   :  { %v90_v25 = vpop.permute.xlu1 %89 }
 0x17a   :  { %v93_v26 = vsub.f32 %v266_v10, %v90_v25 }
 0x17c   :  { %v179_v27 = vpop.eup %178  ;;  %v96_v28 = vmul.f32 1.442695, %v93_v26 }
 0x17d   :  { %98 = vadd.xlane.f32.xlu2 %v179_v27 }
 0x17e   :  { %180 = vpow2.f32 %v96_v28 }
 0x17f   :  { %182 = vpow2.f32 %v76_v30 }
 0x180   :  { %184 = vpow2.f32 %v78_v31 }
 0x184   :  { %v181_v29 = vpop.eup %180 }
 0x185   :  { %100 = vadd.xlane.f32.xlu2 %v181_v29  ;;  %v183_v32 = vpop.eup %182 }
 0x186   :  { %v80_v34 = vmul.f32 %v183_v32, %v72_v33  ;;  %v185_v37 = vpop.eup %184 }
 0x187   :  { %v81_v39 = vmul.f32 %v185_v37, %v73_v38 }
 0x1f0   :  { %v99_v35 = vpop.xlane.xlu2 %98 }
 0x1f1   :  { %v102_v36 = vadd.f32 %v99_v35, %v80_v34 }
 0x1f3   :  { %105 = vst.msk [vmem:[#allocation3] sm:$0xff] %vm19_vm1, %v102_v36 }
 0x1f8   :  { %v101_v40 = vpop.xlane.xlu2 %100 }
 0x1f9   :  { %v103_v41 = vadd.f32 %v101_v40, %v81_v39 }
 0x1fa   :  { %v120_v42 = vld [vmem:[#allocation3] sm:$0xff] }
 0x1fb   :  { %106 = vst.msk [vmem:[#allocation3 + $0x8] sm:$0xff] %vm19_vm1, %v103_v41  ;;  %186 = vlog2.f32 %v120_v42 }
 0x201   :  { %v187_v43 = vpop.eup %186 }
 0x202   :  { %v123_v44 = vmul.f32 0.6931472, %v187_v43  ;;  %v121_v45 = vld [vmem:[#allocation3 + $0x8] sm:$0xff] }
 0x203   :  { %188 = vlog2.f32 %v121_v45 }
 0x204   :  { %v126_v47 = vadd.f32 %v123_v44, %v118_v46 }
 0x206   :  { %132 = vperm.xlu0 %176, %v126_v47  }
 0x209   :  { %v189_v48 = vpop.eup %188 }
 0x20a   :  { %v125_v49 = vmul.f32 0.6931472, %v189_v48 }
 0x20c   :  { %v127_v51 = vadd.f32 %v125_v49, %v119_v50 }
 0x20e   :  { %137 = vperm.xlu1 %175, %v127_v51  }
 0x278   :  { %v133_v52 = vpop.permute.xlu0 %132 }
 0x279   :  { %v140_v53 = vsub.f32 %v263_v8, %v133_v52 }
 0x27b   :  { %142 = vst [vmem:[#allocation4] sm:$0xff] %v140_v53 }
 0x280   :  { %v138_v54 = vpop.permute.xlu1 %137 }
 0x281   :  { %v141_v55 = vsub.f32 %v266_v10, %v138_v54 }
 0x283   :  { %143 = vst [vmem:[#allocation4 + $0x8] sm:$0xff] %v141_v55 }
 0x284   :  { %156 = dma.vmem_to_hbm [thread:$0]  %s149_s1, 256, %s151_s27, [#allocation5], %s220_s28, %s220_s28, %s221_s29  }
 0x285   :  { %214 = dma.done.wait [#allocation5], 256  }
 0x286   :  { %215 = vsyncadd [#allocation5], 4294967040 }
 0x287   :  { %161 = vsyncpa [#allocation5], 1 }

// kernel: bert_lm_forward.2
= control target key start
LH: loop header
LB: loop body
LE: loop exit
PB: predicated region body
PF: predicated region fallthrough
CT: control target
= control target key end

     0   :  { %vm23_vm0 = vcmask 261120   ;;  %s110_s1 = inlined_call_operand.vmem [shape: f32[32,128], index: 1, kind: input, shape index: {}]   ;;  %s111_s2 = inlined_call_operand.vmem [shape: f32[1,128], index: 2, kind: input, shape index: {}]   ;;  %s112_s0 = inlined_call_operand.vmem [shape: f32[8,32], index: 0, kind: input, shape index: {}]   ;;  %s113_s3 = inlined_call_operand.vmem [shape: f32[8,128], index: 3, kind: output, shape index: {}]  }
   0x1   :  { %v18_v0 = vld [vmem:[%s110_s1 + $0x18] sm:$0xff]  ;;  %v17_v1 = vld [vmem:[%s110_s1 + $0x10] sm:$0xff]  ;;  %v16_v2 = vld [vmem:[%s110_s1 + $0x8] sm:$0xff] }
   0x2   :  { %39 = vmatpush.msra.mxu0 %v18_v0  ;;  %v15_v3 = vld [vmem:[%s110_s1] sm:$0xff] }
   0x3   :  { %v14_v4 = vld [vmem:[%s112_s0] sm:$0xff] }
   0x4   :  { %40 = vmatpush.msra.mxu0 %v17_v1  ;;  %v64_v5 = vld [vmem:[%s111_s2] ss:$0 sm:$0xff] }
   0x6   :  { %41 = vmatpush.msra.mxu0 %v16_v2 }
   0x8   :  { %42 = vmatpush.msra.mxu0 %v15_v3 }
   0x9   :  { %63 = vmatmul.msk.f32.vlgmr.msra.gmra.mxu0 %vm23_vm0, %v14_v4 }
  0x86   :  { %v44_v6 = vpop.f32.mrf.mxu0 }
  0x87   :  { %v45_v7 = vadd.f32 %v64_v5, %v44_v6 }
  0x89   :  { %47 = vmax.xlane.f32.xlu0 %v45_v7 }
  0xfc   :  { %v48_v8 = vpop.xlane.xlu0 %47 }
  0xfd   :  { %v49_v9 = vsub.f32 %v45_v7, %v48_v8 }
  0xff   :  { %v50_v10 = vmul.f32 1.442695, %v49_v9 }
 0x101   :  { %65 = vpow2.f32 %v50_v10 }
 0x107   :  { %v66_v11 = vpop.eup %65 }
 0x108   :  { %52 = vadd.xlane.f32.xlu0 %v66_v11 }
 0x17b   :  { %v53_v12 = vpop.xlane.xlu0 %52 }
 0x17c   :  { %67 = vlog2.f32 %v53_v12 }
 0x182   :  { %v68_v13 = vpop.eup %67 }
 0x183   :  { %v55_v14 = vmul.f32 0.6931472, %v68_v13 }
 0x185   :  { %v56_v15 = vadd.f32 %v55_v14, %v48_v8 }
 0x187   :  { %v57_v16 = vsub.f32 %v45_v7, %v56_v15 }
 0x189   :  { %58 = vst [vmem:[%s113_s3] sm:$0xff] %v57_v16 }

</bundles_post_ra>
